<compile_context>
chip_gen: v7x
topology: tpu7x:2x2x1
jax: 0.10.0
libtpu: 0.0.40
codegen_flags: <defaults>
</compile_context>

<pallas_src>
import math

import jax
import jax.numpy as jnp
from jax import lax
from jax.experimental import pallas as pl
from jax.experimental.pallas import tpu as pltpu

NEG_SLOPE = 0.01                      # torch.nn.LeakyReLU default
MXU_DTYPE = jnp.bfloat16              # MXU input dtype for the large products
ADJ_STORE_DTYPE = jnp.bfloat16        # HBM dtype for 0/1 adjacency / incidence


def _eye(n, dtype):
    row = lax.broadcasted_iota(jnp.int32, (n, n), 0)
    col = lax.broadcasted_iota(jnp.int32, (n, n), 1)
    return (row == col).astype(dtype)


def _inv_sqrt_nonzero(d):
    # matches: D = sqrt(D); D[D != 0] = D[D != 0] ** -1   (diagonal D)
    nz = d != 0
    return jnp.where(nz, lax.rsqrt(jnp.where(nz, d, 1.0)), 0.0)


def _leaky_relu(x):
    return jnp.where(x >= 0, x, NEG_SLOPE * x)


# ---------------------------------------------------------------------------
# Fused CensNet kernel: one grid step = one tile of batch elements.
# ---------------------------------------------------------------------------
def censnet_kernel(node_ref, edge_ref, nadj_ref, eadj_ref, dv_ref, de_ref, t_ref,
                   node_w_ref, ewv_ref, nwv_ref, edge_w_ref,
                   node_out_ref, edge_out_ref):
    f32 = jnp.float32
    bt, n, _ = nadj_ref.shape
    e = eadj_ref.shape[1]

    node_w = node_w_ref[...]          # (Fv_in, Fv_out)
    ewv = ewv_ref[...]                # (1, Fe_in)   NodeCensNet.edge_weight (row)
    nwv = nwv_ref[...]                # (Fv_out, 1)  EdgeCensNet.node_weight (col)
    edge_w = edge_w_ref[...]          # (Fe_in, Fe_out)

    eye_n = _eye(n, f32)              # hoisted out of the batch loop
    eye_e = _eye(e, f32)

    dims_lane = (((1,), (1,)), ((), ()))   # contract last dim of both   (A @ B^T)
    dims_sub = (((0,), (0,)), ((), ()))    # contract first dim of both  (A^T @ B)

    def per_batch(b):
        t_bf = t_ref[b]                               # (N, E)  bf16 (exact 0/1)
        node_b = node_ref[b]                          # (N, Fv_in) f32
        edge_b = edge_ref[b]                          # (E, Fe_in) f32

        # ---------------- NodeCensNet + LeakyReLU ----------------
        dv_inv = _inv_sqrt_nonzero(dv_ref[b])                  # (1, N)
        a_v = (nadj_ref[b].astype(f32) + eye_n) * dv_inv       # (N, N) column scale

        # HePe = edge @ edge_weight as a (1, E) row (thin MXU matmul)
        he_row = lax.dot_general(ewv, edge_b, dims_lane,
                                 preferred_element_type=f32)          # (1, E)
        t_he = (t_bf * he_row).astype(MXU_DTYPE)                      # (N, E)
        # T diag(HePe) T^T  -- transpose folded into the contraction dims
        prod = lax.dot_general(t_he, t_bf, dims_lane,
                               preferred_element_type=f32)            # (N, N)
        agg = (prod * a_v).astype(MXU_DTYPE)
        h = jnp.dot(agg, node_b.astype(MXU_DTYPE),
                    preferred_element_type=f32)                       # (N, Fv_in)
        h = jnp.dot(h, node_w, preferred_element_type=f32)            # (N, Fv_out)
        node_h = _leaky_relu(h)
        node_out_ref[b] = node_h.astype(node_out_ref.dtype)

        # ---------------- EdgeCensNet + LeakyReLU ----------------
        de_inv = _inv_sqrt_nonzero(de_ref[b])                  # (1, E)
        a_e = (eadj_ref[b].astype(f32) + eye_e) * de_inv       # (E, E) column scale

        # HvPv = node_h @ node_weight as a (N, 1) column -- node_h stays in VMEM
        hv_col = jnp.dot(node_h, nwv, preferred_element_type=f32)     # (N, 1)
        t_hv = (t_bf * hv_col).astype(MXU_DTYPE)                      # (N, E)
        # T^T diag(HvPv) T  -- contraction over N, no explicit transpose
        prod_e = lax.dot_general(t_hv, t_bf, dims_sub,
                                 preferred_element_type=f32)          # (E, E)
        agg_e = (prod_e * a_e).astype(MXU_DTYPE)
        g = jnp.dot(agg_e, edge_b.astype(MXU_DTYPE),
                    preferred_element_type=f32)                       # (E, Fe_in)
        g = jnp.dot(g, edge_w, preferred_element_type=f32)            # (E, Fe_out)
        edge_out_ref[b] = _leaky_relu(g).astype(edge_out_ref.dtype)

    if bt <= 4:
        for b in range(bt):            # tiny tile: full unroll (LLO visibility)
            per_batch(b)
    else:
        @pl.loop(0, bt)                # big tile: dynamic loop bounds live ranges
        def _(b):
            per_batch(b)


# ---------------------------------------------------------------------------
# Wrapper
# ---------------------------------------------------------------------------
def _batch_spec(shape, bt):
    trail = tuple(int(s) for s in shape[1:])
    nt = len(trail)
    return pl.BlockSpec((bt,) + trail, lambda i: (i,) + (0,) * nt)


def _param_spec(shape):
    nd = len(shape)
    return pl.BlockSpec(tuple(int(s) for s in shape), lambda i: (0,) * nd)


def _vmem_budget_bytes():
    """Usable per-core VMEM (85% of physical, headroom for Mosaic scratch)."""
    try:
        phys = int(pltpu.get_tpu_info().vmem_capacity_bytes)
    except Exception:
        phys = 64 << 20        # conservative fallback (v7x per-core size)
    return max(16 << 20, int(phys * 0.85))


def _pick_batch_tile(batch, per_batch_block_bytes, fixed_bytes, budget):
    """Largest divisor of `batch` whose double-buffered block fits the VMEM
    budget, keeping >=2 grid steps when possible for DMA pipelining."""
    avail = max(budget - fixed_bytes, per_batch_block_bytes)
    cap = max(1, avail // max(per_batch_block_bytes, 1))
    divs = [d for d in range(1, batch + 1) if batch % d == 0 and d <= cap]
    if not divs:
        return 1
    multi = [d for d in divs if batch // d >= 2]
    return max(multi) if multi else max(divs)


def censnet_forward(node, edge, node_adj, edge_adj, d_v, d_e, t, params,
                    batch_tile=None):
    f32 = jnp.float32
    node = node.astype(f32)
    edge = edge.astype(f32)
    # Quadratic-size 0/1 inputs go to HBM in bf16 (exact for binary graphs).
    node_adj_n = node_adj.astype(ADJ_STORE_DTYPE)
    edge_adj_n = edge_adj.astype(ADJ_STORE_DTYPE)
    t_n = t.astype(ADJ_STORE_DTYPE)

    B, N, Fv_in = node.shape
    E, Fe_in = edge.shape[1], edge.shape[2]
    node_w = params["node_net_node_w"].astype(f32)                 # (Fv_in, Fv_out)
    ewv_row = params["node_net_edge_w"].reshape(1, Fe_in).astype(f32)
    edge_w = params["edge_net_edge_w"].astype(f32)                 # (Fe_in, Fe_out)
    Fv_out = node_w.shape[1]
    Fe_out = edge_w.shape[1]
    nwv_col = params["edge_net_node_w"].reshape(Fv_out, 1).astype(f32)

    # Contract: D_v / D_e are diagonal degree matrices (diag() in the caller);
    # only their diagonal is used.
    dv_vec = jnp.diagonal(d_v, axis1=1, axis2=2)[:, None, :].astype(f32)  # (B,1,N)
    de_vec = jnp.diagonal(d_e, axis1=1, axis2=2)[:, None, :].astype(f32)  # (B,1,E)

    # --- accurate VMEM accounting (no double-counted dtype factors) ---------
    adj_b = jnp.dtype(ADJ_STORE_DTYPE).itemsize
    in_b = 4 * (N * Fv_in + E * Fe_in + N + E) + adj_b * (N * N + E * E + N * E)
    out_b = 4 * (N * Fv_out + E * Fe_out)
    per_batch_block = 2 * (in_b + out_b)          # double-buffered in+out blocks
    param_bytes = 4 * (Fv_in * Fv_out + Fe_in + Fv_out + Fe_in * Fe_out)
    tmp_bytes = (4 * (3 * N * N + 3 * E * E + 3 * N * E
                      + 2 * N * (Fv_in + Fv_out) + 2 * E * (Fe_in + Fe_out))
                 + (1 << 20))                      # in-kernel temporaries + slack
    fixed_bytes = 2 * param_bytes + tmp_bytes

    budget = _vmem_budget_bytes()
    bt = batch_tile if batch_tile is not None else _pick_batch_tile(
        B, per_batch_block, fixed_bytes, budget)
    assert B % bt == 0, "batch tile must divide batch"
    grid = (B // bt,)

    vmem_limit = int(min(budget,
                         max(32 << 20,
                             bt * per_batch_block + fixed_bytes + (2 << 20))))

    out_shapes = (jax.ShapeDtypeStruct((B, N, Fv_out), f32),
                  jax.ShapeDtypeStruct((B, E, Fe_out), f32))

    node_h, edge_h = pl.pallas_call(
        censnet_kernel,
        out_shape=out_shapes,
        grid=grid,
        in_specs=[
            _batch_spec(node.shape, bt),
            _batch_spec(edge.shape, bt),
            _batch_spec(node_adj_n.shape, bt),
            _batch_spec(edge_adj_n.shape, bt),
            _batch_spec(dv_vec.shape, bt),
            _batch_spec(de_vec.shape, bt),
            _batch_spec(t_n.shape, bt),
            _param_spec(node_w.shape),
            _param_spec(ewv_row.shape),
            _param_spec(nwv_col.shape),
            _param_spec(edge_w.shape),
        ],
        out_specs=[
            _batch_spec((B, N, Fv_out), bt),
            _batch_spec((B, E, Fe_out), bt),
        ],
        compiler_params=pltpu.CompilerParams(
            dimension_semantics=("parallel",),
            vmem_limit_bytes=vmem_limit),
    )(node, edge, node_adj_n, edge_adj_n, dv_vec, de_vec, t_n,
      node_w, ewv_row, nwv_col, edge_w)
    return node_h, edge_h


# ---------------------------------------------------------------------------
# Pure-JAX reference (mirrors the PyTorch math exactly, in f32)
# ---------------------------------------------------------------------------
def _ref_inv_sqrt(d):
    s = jnp.sqrt(d)
    return jnp.where(s != 0, 1.0 / jnp.where(s != 0, s, 1.0), 0.0)


def censnet_ref(node, edge, node_adj, edge_adj, d_v, d_e, t, params):
    B, N, _ = node.shape
    E = edge.shape[1]
    # node layer
    dinv = _ref_inv_sqrt(d_v)
    adj = node_adj + jnp.eye(N, dtype=node_adj.dtype)[None]
    a_tilde = adj @ dinv
    he_pe = edge @ params["node_net_edge_w"]                 # (B, E)
    out = (t * he_pe[:, None, :]) @ jnp.swapaxes(t, 1, 2)    # (B, N, N)
    out = out * a_tilde
    out = out @ node @ params["node_net_node_w"]
    node_h = jnp.where(out >= 0, out, NEG_SLOPE * out)
    # edge layer
    dinv = _ref_inv_sqrt(d_e)
    adj = edge_adj + jnp.eye(E, dtype=edge_adj.dtype)[None]
    a_tilde = adj @ dinv
    hv_pv = node_h @ params["edge_net_node_w"]               # (B, N)
    out = (jnp.swapaxes(t, 1, 2) * hv_pv[:, None, :]) @ t    # (B, E, E)
    out = out * a_tilde
    out = out @ edge @ params["edge_net_edge_w"]
    edge_h = jnp.where(out >= 0, out, NEG_SLOPE * out)
    return node_h, edge_h


# ---------------------------------------------------------------------------
# Demo / correctness check
# ---------------------------------------------------------------------------
def _make_graph(key, B, N, E, node_in, edge_in):
    keys = jax.random.split(key, 5)
    node = jax.random.normal(keys[0], (B, N, node_in), jnp.float32)
    edge = jax.random.normal(keys[1], (B, E, edge_in), jnp.float32)
    t = jax.random.bernoulli(keys[2], 0.4, (B, N, E)).astype(jnp.float32)
    na = jax.random.bernoulli(keys[3], 0.4, (B, N, N)).astype(jnp.float32)
    node_adj = jnp.triu(na, 1) + jnp.swapaxes(jnp.triu(na, 1), 1, 2)
    ea = jax.random.bernoulli(keys[4], 0.4, (B, E, E)).astype(jnp.float32)
    edge_adj = jnp.triu(ea, 1) + jnp.swapaxes(jnp.triu(ea, 1), 1, 2)
    d_v = jax.vmap(jnp.diag)(node_adj.sum(-1))   # (B, N, N) diagonal degree
    d_e = jax.vmap(jnp.diag)(edge_adj.sum(-1))   # (B, E, E) diagonal degree
    return node, edge, node_adj, edge_adj, d_v, d_e, t


def _make_params(key, node_in, edge_in, node_out, edge_out):
    keys = jax.random.split(key, 4)
    stdv_nn = 1.0 / math.sqrt(node_out)   # NodeCensNet.node_weight: size(1)=node_out
    stdv_ne = 1.0 / math.sqrt(edge_in)    # NodeCensNet.edge_weight: size(0)=edge_in
    stdv_en = 1.0 / math.sqrt(node_out)   # EdgeCensNet.node_weight: size(0)=node_out
    stdv_ee = 1.0 / math.sqrt(edge_out)   # EdgeCensNet.edge_weight: size(1)=edge_out
    return {
        "node_net_node_w": jax.random.uniform(keys[0], (node_in, node_out),
                                              jnp.float32, -stdv_nn, stdv_nn),
        "node_net_edge_w": jax.random.uniform(keys[1], (edge_in,),
                                              jnp.float32, -stdv_ne, stdv_ne),
        "edge_net_edge_w": jax.random.uniform(keys[2], (edge_in, edge_out),
                                              jnp.float32, -stdv_ee, stdv_ee),
        "edge_net_node_w": jax.random.uniform(keys[3], (node_out,),
                                              jnp.float32, -stdv_en, stdv_en),
    }


if __name__ == "__main__":
    key = jax.random.PRNGKey(0)
    k1, k2, k3, k4 = jax.random.split(key, 4)
    node_in, edge_in, node_out, edge_out = 4, 6, 8, 8
    # Tolerances loosened: PyTorch ref is f64, kernel is f32 with bf16 MXU inputs
    # for the incidence + aggregation products (~1-3% relative drift expected).
    RTOL = ATOL = 5e-2

    # Case 1: module-sized demo (batch tile 1 -> unrolled per-batch path).
    B, N, E = 2, 8, 12
    data = _make_graph(k1, B, N, E, node_in, edge_in)
    params = _make_params(k2, node_in, edge_in, node_out, edge_out)
    node_h, edge_h = censnet_forward(*data, params)
    node_h = jax.block_until_ready(node_h)
    edge_h = jax.block_until_ready(edge_h)
    node_r, edge_r = censnet_ref(*data, params)
    assert node_h.shape == (B, N, node_out) and edge_h.shape == (B, E, edge_out)
    assert jnp.allclose(node_h, node_r, rtol=RTOL, atol=ATOL)
    assert jnp.allclose(edge_h, edge_r, rtol=RTOL, atol=ATOL)

    # Case 2: larger batch with batch_tile=8 -> exercises the dynamic pl.loop
    # per-batch path used for big VMEM-filling tiles.
    B2, N2, E2 = 16, 16, 24
    data2 = _make_graph(k3, B2, N2, E2, node_in, edge_in)
    params2 = _make_params(k4, node_in, edge_in, node_out, edge_out)
    node_h2, edge_h2 = censnet_forward(*data2, params2, batch_tile=8)
    node_h2 = jax.block_until_ready(node_h2)
    edge_h2 = jax.block_until_ready(edge_h2)
    node_r2, edge_r2 = censnet_ref(*data2, params2)
    assert jnp.allclose(node_h2, node_r2, rtol=RTOL, atol=ATOL)
    assert jnp.allclose(edge_h2, edge_r2, rtol=RTOL, atol=ATOL)

    print("KERNEL_OK")
</pallas_src>

<mosaic_0001>
module attributes {stable_mosaic.version = 11 : i64} {
  func.func @censnet_kernel(%arg0: i32, %arg1: memref<1x8x4xf32, #tpu.memory_space<vmem>>, %arg2: memref<1x12x6xf32, #tpu.memory_space<vmem>>, %arg3: memref<1x8x8xbf16, #tpu.memory_space<vmem>>, %arg4: memref<1x12x12xbf16, #tpu.memory_space<vmem>>, %arg5: memref<1x1x8xf32, #tpu.memory_space<vmem>>, %arg6: memref<1x1x12xf32, #tpu.memory_space<vmem>>, %arg7: memref<1x8x12xbf16, #tpu.memory_space<vmem>>, %arg8: memref<4x8xf32, #tpu.memory_space<vmem>>, %arg9: memref<1x6xf32, #tpu.memory_space<vmem>>, %arg10: memref<8x1xf32, #tpu.memory_space<vmem>>, %arg11: memref<6x8xf32, #tpu.memory_space<vmem>>, %arg12: memref<1x8x8xf32, #tpu.memory_space<vmem>>, %arg13: memref<1x12x8xf32, #tpu.memory_space<vmem>>) attributes {dimension_semantics = [#tpu.dimension_semantics<parallel>], iteration_bounds = array<i64: 2>, scalar_prefetch = 0 : i64, scratch_operands = 0 : i64, tpu.core_type = #tpu.core_type<tc>, window_params = [{transform_indices = @transform_0, window_bounds = array<i64: 1, 8, 4>}, {transform_indices = @transform_1, window_bounds = array<i64: 1, 12, 6>}, {transform_indices = @transform_2, window_bounds = array<i64: 1, 8, 8>}, {transform_indices = @transform_3, window_bounds = array<i64: 1, 12, 12>}, {transform_indices = @transform_4, window_bounds = array<i64: 1, 1, 8>}, {transform_indices = @transform_5, window_bounds = array<i64: 1, 1, 12>}, {transform_indices = @transform_6, window_bounds = array<i64: 1, 8, 12>}, {pipeline_mode = #tpu.pipeline_mode<synchronous>, transform_indices = @transform_7, window_bounds = array<i64: 4, 8>}, {pipeline_mode = #tpu.pipeline_mode<synchronous>, transform_indices = @transform_8, window_bounds = array<i64: 1, 6>}, {pipeline_mode = #tpu.pipeline_mode<synchronous>, transform_indices = @transform_9, window_bounds = array<i64: 8, 1>}, {pipeline_mode = #tpu.pipeline_mode<synchronous>, transform_indices = @transform_10, window_bounds = array<i64: 6, 8>}, {transform_indices = @transform_11, window_bounds = array<i64: 1, 8, 8>}, {transform_indices = @transform_12, window_bounds = array<i64: 1, 12, 8>}]} {
    %c0 = arith.constant 0 : index
    %c0_0 = arith.constant 0 : index
    %0 = vector.load %arg8[%c0, %c0_0] : memref<4x8xf32, #tpu.memory_space<vmem>>, vector<4x8xf32>
    %c0_1 = arith.constant 0 : index
    %c0_2 = arith.constant 0 : index
    %1 = vector.load %arg9[%c0_1, %c0_2] : memref<1x6xf32, #tpu.memory_space<vmem>>, vector<1x6xf32>
    %c0_3 = arith.constant 0 : index
    %c0_4 = arith.constant 0 : index
    %2 = vector.load %arg10[%c0_3, %c0_4] : memref<8x1xf32, #tpu.memory_space<vmem>>, vector<8x1xf32>
    %c0_5 = arith.constant 0 : index
    %c0_6 = arith.constant 0 : index
    %3 = vector.load %arg11[%c0_5, %c0_6] : memref<6x8xf32, #tpu.memory_space<vmem>>, vector<6x8xf32>
    %4 = tpu.iota {dimensions = array<i32: 0>} : vector<8x8xi32>
    %5 = tpu.iota {dimensions = array<i32: 1>} : vector<8x8xi32>
    %6 = arith.cmpi eq, %4, %5 : vector<8x8xi32>
    %7 = arith.extui %6 : vector<8x8xi1> to vector<8x8xi32>
    %8 = arith.sitofp %7 : vector<8x8xi32> to vector<8x8xf32>
    %9 = tpu.iota {dimensions = array<i32: 0>} : vector<12x12xi32>
    %10 = tpu.iota {dimensions = array<i32: 1>} : vector<12x12xi32>
    %11 = arith.cmpi eq, %9, %10 : vector<12x12xi32>
    %12 = arith.extui %11 : vector<12x12xi1> to vector<12x12xi32>
    %13 = arith.sitofp %12 : vector<12x12xi32> to vector<12x12xf32>
    %c0_7 = arith.constant 0 : index
    %c0_8 = arith.constant 0 : index
    %c0_9 = arith.constant 0 : index
    %14 = vector.load %arg7[%c0_7, %c0_8, %c0_9] : memref<1x8x12xbf16, #tpu.memory_space<vmem>>, vector<1x8x12xbf16>
    %15 = vector.shape_cast %14 : vector<1x8x12xbf16> to vector<8x12xbf16>
    %c0_10 = arith.constant 0 : index
    %c0_11 = arith.constant 0 : index
    %c0_12 = arith.constant 0 : index
    %16 = vector.load %arg1[%c0_10, %c0_11, %c0_12] : memref<1x8x4xf32, #tpu.memory_space<vmem>>, vector<1x8x4xf32>
    %17 = vector.shape_cast %16 : vector<1x8x4xf32> to vector<8x4xf32>
    %c0_13 = arith.constant 0 : index
    %c0_14 = arith.constant 0 : index
    %c0_15 = arith.constant 0 : index
    %18 = vector.load %arg2[%c0_13, %c0_14, %c0_15] : memref<1x12x6xf32, #tpu.memory_space<vmem>>, vector<1x12x6xf32>
    %19 = vector.shape_cast %18 : vector<1x12x6xf32> to vector<12x6xf32>
    %c0_16 = arith.constant 0 : index
    %c0_17 = arith.constant 0 : index
    %c0_18 = arith.constant 0 : index
    %20 = vector.load %arg5[%c0_16, %c0_17, %c0_18] : memref<1x1x8xf32, #tpu.memory_space<vmem>>, vector<1x1x8xf32>
    %21 = vector.shape_cast %20 : vector<1x1x8xf32> to vector<1x8xf32>
    %cst = arith.constant 0.000000e+00 : f32
    %22 = vector.broadcast %cst : f32 to vector<1x8xf32>
    %23 = arith.cmpf one, %21, %22 : vector<1x8xf32>
    %cst_19 = arith.constant 1.000000e+00 : f32
    %24 = vector.broadcast %cst_19 : f32 to vector<1x8xf32>
    %25 = arith.select %23, %21, %24 : vector<1x8xi1>, vector<1x8xf32>
    %26 = math.rsqrt %25 : vector<1x8xf32>
    %cst_20 = arith.constant 0.000000e+00 : f32
    %27 = vector.broadcast %cst_20 : f32 to vector<1x8xf32>
    %28 = arith.select %23, %26, %27 : vector<1x8xi1>, vector<1x8xf32>
    %c0_21 = arith.constant 0 : index
    %c0_22 = arith.constant 0 : index
    %c0_23 = arith.constant 0 : index
    %29 = vector.load %arg3[%c0_21, %c0_22, %c0_23] : memref<1x8x8xbf16, #tpu.memory_space<vmem>>, vector<1x8x8xbf16>
    %30 = vector.shape_cast %29 : vector<1x8x8xbf16> to vector<8x8xbf16>
    %31 = arith.extf %30 : vector<8x8xbf16> to vector<8x8xf32>
    %32 = arith.addf %31, %8 : vector<8x8xf32>
    %33 = vector.broadcast %28 : vector<1x8xf32> to vector<8x8xf32>
    %34 = arith.mulf %32, %33 : vector<8x8xf32>
    %cst_24 = arith.constant dense<0.000000e+00> : vector<1x12xf32>
    %35 = tpu.matmul %1, %19, %cst_24 {dimension_numbers = #tpu.dot_dimension_numbers<[1], [1], [0], [0], [0, 0, 1, 0], [], []>} : vector<1x6xf32>, vector<12x6xf32>, vector<1x12xf32> -> vector<1x12xf32>
    %36 = arith.extf %15 : vector<8x12xbf16> to vector<8x12xf32>
    %37 = vector.broadcast %35 : vector<1x12xf32> to vector<8x12xf32>
    %38 = arith.mulf %36, %37 : vector<8x12xf32>
    %39 = arith.truncf %38 : vector<8x12xf32> to vector<8x12xbf16>
    %cst_25 = arith.constant dense<0.000000e+00> : vector<8x8xf32>
    %40 = tpu.matmul %39, %15, %cst_25 {dimension_numbers = #tpu.dot_dimension_numbers<[1], [1], [0], [0], [0, 0, 1, 0], [], []>} : vector<8x12xbf16>, vector<8x12xbf16>, vector<8x8xf32> -> vector<8x8xf32>
    %41 = arith.mulf %40, %34 : vector<8x8xf32>
    %42 = arith.truncf %41 : vector<8x8xf32> to vector<8x8xbf16>
    %43 = arith.truncf %17 : vector<8x4xf32> to vector<8x4xbf16>
    %cst_26 = arith.constant dense<0.000000e+00> : vector<8x4xf32>
    %44 = tpu.matmul %42, %43, %cst_26 {dimension_numbers = #tpu.dot_dimension_numbers<[1], [0], [0], [1], [0, 0, 1, 1], [], []>} : vector<8x8xbf16>, vector<8x4xbf16>, vector<8x4xf32> -> vector<8x4xf32>
    %cst_27 = arith.constant dense<0.000000e+00> : vector<8x8xf32>
    %45 = tpu.matmul %44, %0, %cst_27 {dimension_numbers = #tpu.dot_dimension_numbers<[1], [0], [0], [1], [0, 0, 1, 1], [], []>} : vector<8x4xf32>, vector<4x8xf32>, vector<8x8xf32> -> vector<8x8xf32>
    %cst_28 = arith.constant 0.000000e+00 : f32
    %46 = vector.broadcast %cst_28 : f32 to vector<8x8xf32>
    %47 = arith.cmpf oge, %45, %46 : vector<8x8xf32>
    %cst_29 = arith.constant 0.00999999977 : f32
    %48 = vector.broadcast %cst_29 : f32 to vector<8x8xf32>
    %49 = arith.mulf %48, %45 : vector<8x8xf32>
    %50 = arith.select %47, %45, %49 : vector<8x8xi1>, vector<8x8xf32>
    %c0_30 = arith.constant 0 : index
    %c0_31 = arith.constant 0 : index
    %c0_32 = arith.constant 0 : index
    %51 = vector.load %arg12[%c0_30, %c0_31, %c0_32] : memref<1x8x8xf32, #tpu.memory_space<vmem>>, vector<1x8x8xf32>
    %52 = vector.shape_cast %51 : vector<1x8x8xf32> to vector<8x8xf32>
    %53 = vector.shape_cast %50 : vector<8x8xf32> to vector<1x8x8xf32>
    tpu.vector_store %arg12[%c0_30, %c0_31, %c0_32], %53 {strides = array<i32>} : memref<1x8x8xf32, #tpu.memory_space<vmem>>, vector<1x8x8xf32>,
    %c0_33 = arith.constant 0 : index
    %c0_34 = arith.constant 0 : index
    %c0_35 = arith.constant 0 : index
    %54 = vector.load %arg6[%c0_33, %c0_34, %c0_35] : memref<1x1x12xf32, #tpu.memory_space<vmem>>, vector<1x1x12xf32>
    %55 = vector.shape_cast %54 : vector<1x1x12xf32> to vector<1x12xf32>
    %cst_36 = arith.constant 0.000000e+00 : f32
    %56 = vector.broadcast %cst_36 : f32 to vector<1x12xf32>
    %57 = arith.cmpf one, %55, %56 : vector<1x12xf32>
    %cst_37 = arith.constant 1.000000e+00 : f32
    %58 = vector.broadcast %cst_37 : f32 to vector<1x12xf32>
    %59 = arith.select %57, %55, %58 : vector<1x12xi1>, vector<1x12xf32>
    %60 = math.rsqrt %59 : vector<1x12xf32>
    %cst_38 = arith.constant 0.000000e+00 : f32
    %61 = vector.broadcast %cst_38 : f32 to vector<1x12xf32>
    %62 = arith.select %57, %60, %61 : vector<1x12xi1>, vector<1x12xf32>
    %c0_39 = arith.constant 0 : index
    %c0_40 = arith.constant 0 : index
    %c0_41 = arith.constant 0 : index
    %63 = vector.load %arg4[%c0_39, %c0_40, %c0_41] : memref<1x12x12xbf16, #tpu.memory_space<vmem>>, vector<1x12x12xbf16>
    %64 = vector.shape_cast %63 : vector<1x12x12xbf16> to vector<12x12xbf16>
    %65 = arith.extf %64 : vector<12x12xbf16> to vector<12x12xf32>
    %66 = arith.addf %65, %13 : vector<12x12xf32>
    %67 = vector.broadcast %62 : vector<1x12xf32> to vector<12x12xf32>
    %68 = arith.mulf %66, %67 : vector<12x12xf32>
    %cst_42 = arith.constant dense<0.000000e+00> : vector<8x1xf32>
    %69 = tpu.matmul %50, %2, %cst_42 {dimension_numbers = #tpu.dot_dimension_numbers<[1], [0], [0], [1], [0, 0, 1, 1], [], []>} : vector<8x8xf32>, vector<8x1xf32>, vector<8x1xf32> -> vector<8x1xf32>
    %70 = arith.extf %15 : vector<8x12xbf16> to vector<8x12xf32>
    %71 = vector.broadcast %69 : vector<8x1xf32> to vector<8x12xf32>
    %72 = arith.mulf %70, %71 : vector<8x12xf32>
    %73 = arith.truncf %72 : vector<8x12xf32> to vector<8x12xbf16>
    %cst_43 = arith.constant dense<0.000000e+00> : vector<12x12xf32>
    %74 = tpu.matmul %73, %15, %cst_43 {dimension_numbers = #tpu.dot_dimension_numbers<[0], [0], [1], [1], [0, 1, 1, 1], [], []>} : vector<8x12xbf16>, vector<8x12xbf16>, vector<12x12xf32> -> vector<12x12xf32>
    %75 = arith.mulf %74, %68 : vector<12x12xf32>
    %76 = arith.truncf %75 : vector<12x12xf32> to vector<12x12xbf16>
    %77 = arith.truncf %19 : vector<12x6xf32> to vector<12x6xbf16>
    %cst_44 = arith.constant dense<0.000000e+00> : vector<12x6xf32>
    %78 = tpu.matmul %76, %77, %cst_44 {dimension_numbers = #tpu.dot_dimension_numbers<[1], [0], [0], [1], [0, 0, 1, 1], [], []>} : vector<12x12xbf16>, vector<12x6xbf16>, vector<12x6xf32> -> vector<12x6xf32>
    %cst_45 = arith.constant dense<0.000000e+00> : vector<12x8xf32>
    %79 = tpu.matmul %78, %3, %cst_45 {dimension_numbers = #tpu.dot_dimension_numbers<[1], [0], [0], [1], [0, 0, 1, 1], [], []>} : vector<12x6xf32>, vector<6x8xf32>, vector<12x8xf32> -> vector<12x8xf32>
    %cst_46 = arith.constant 0.000000e+00 : f32
    %80 = vector.broadcast %cst_46 : f32 to vector<12x8xf32>
    %81 = arith.cmpf oge, %79, %80 : vector<12x8xf32>
    %cst_47 = arith.constant 0.00999999977 : f32
    %82 = vector.broadcast %cst_47 : f32 to vector<12x8xf32>
    %83 = arith.mulf %82, %79 : vector<12x8xf32>
    %84 = arith.select %81, %79, %83 : vector<12x8xi1>, vector<12x8xf32>
    %c0_48 = arith.constant 0 : index
    %c0_49 = arith.constant 0 : index
    %c0_50 = arith.constant 0 : index
    %85 = vector.load %arg13[%c0_48, %c0_49, %c0_50] : memref<1x12x8xf32, #tpu.memory_space<vmem>>, vector<1x12x8xf32>
    %86 = vector.shape_cast %85 : vector<1x12x8xf32> to vector<12x8xf32>
    %87 = vector.shape_cast %84 : vector<12x8xf32> to vector<1x12x8xf32>
    tpu.vector_store %arg13[%c0_48, %c0_49, %c0_50], %87 {strides = array<i32>} : memref<1x12x8xf32, #tpu.memory_space<vmem>>, vector<1x12x8xf32>,
    return
  }
  func.func @transform_0(%arg0: i32) -> (i32, i32, i32) {
    %c0_i32 = arith.constant 0 : i32
    %c0_i32_0 = arith.constant 0 : i32
    %c0_i32_1 = arith.constant 0 : i32
    return %arg0, %c0_i32, %c0_i32_0 : i32, i32, i32
  }
  func.func @transform_1(%arg0: i32) -> (i32, i32, i32) {
    %c0_i32 = arith.constant 0 : i32
    %c0_i32_0 = arith.constant 0 : i32
    %c0_i32_1 = arith.constant 0 : i32
    return %arg0, %c0_i32, %c0_i32_0 : i32, i32, i32
  }
  func.func @transform_2(%arg0: i32) -> (i32, i32, i32) {
    %c0_i32 = arith.constant 0 : i32
    %c0_i32_0 = arith.constant 0 : i32
    %c0_i32_1 = arith.constant 0 : i32
    return %arg0, %c0_i32, %c0_i32_0 : i32, i32, i32
  }
  func.func @transform_3(%arg0: i32) -> (i32, i32, i32) {
    %c0_i32 = arith.constant 0 : i32
    %c0_i32_0 = arith.constant 0 : i32
    %c0_i32_1 = arith.constant 0 : i32
    return %arg0, %c0_i32, %c0_i32_0 : i32, i32, i32
  }
  func.func @transform_4(%arg0: i32) -> (i32, i32, i32) {
    %c0_i32 = arith.constant 0 : i32
    %c0_i32_0 = arith.constant 0 : i32
    %c0_i32_1 = arith.constant 0 : i32
    return %arg0, %c0_i32, %c0_i32_0 : i32, i32, i32
  }
  func.func @transform_5(%arg0: i32) -> (i32, i32, i32) {
    %c0_i32 = arith.constant 0 : i32
    %c0_i32_0 = arith.constant 0 : i32
    %c0_i32_1 = arith.constant 0 : i32
    return %arg0, %c0_i32, %c0_i32_0 : i32, i32, i32
  }
  func.func @transform_6(%arg0: i32) -> (i32, i32, i32) {
    %c0_i32 = arith.constant 0 : i32
    %c0_i32_0 = arith.constant 0 : i32
    %c0_i32_1 = arith.constant 0 : i32
    return %arg0, %c0_i32, %c0_i32_0 : i32, i32, i32
  }
  func.func @transform_7(%arg0: i32) -> (i32, i32) {
    %c0_i32 = arith.constant 0 : i32
    %c0_i32_0 = arith.constant 0 : i32
    %c0_i32_1 = arith.constant 0 : i32
    return %c0_i32, %c0_i32_0 : i32, i32
  }
  func.func @transform_8(%arg0: i32) -> (i32, i32) {
    %c0_i32 = arith.constant 0 : i32
    %c0_i32_0 = arith.constant 0 : i32
    %c0_i32_1 = arith.constant 0 : i32
    return %c0_i32, %c0_i32_0 : i32, i32
  }
  func.func @transform_9(%arg0: i32) -> (i32, i32) {
    %c0_i32 = arith.constant 0 : i32
    %c0_i32_0 = arith.constant 0 : i32
    %c0_i32_1 = arith.constant 0 : i32
    return %c0_i32, %c0_i32_0 : i32, i32
  }
  func.func @transform_10(%arg0: i32) -> (i32, i32) {
    %c0_i32 = arith.constant 0 : i32
    %c0_i32_0 = arith.constant 0 : i32
    %c0_i32_1 = arith.constant 0 : i32
    return %c0_i32, %c0_i32_0 : i32, i32
  }
  func.func @transform_11(%arg0: i32) -> (i32, i32, i32) {
    %c0_i32 = arith.constant 0 : i32
    %c0_i32_0 = arith.constant 0 : i32
    %c0_i32_1 = arith.constant 0 : i32
    return %arg0, %c0_i32, %c0_i32_0 : i32, i32, i32
  }
  func.func @transform_12(%arg0: i32) -> (i32, i32, i32) {
    %c0_i32 = arith.constant 0 : i32
    %c0_i32_0 = arith.constant 0 : i32
    %c0_i32_1 = arith.constant 0 : i32
    return %arg0, %c0_i32, %c0_i32_0 : i32, i32, i32
  }
}

</mosaic_0001>

<bundles_post_ra>
// kernel: tpu_custom_call.1
= control target key start
LH: loop header
LB: loop body
LE: loop exit
PB: predicated region body
PF: predicated region fallthrough
CT: control target
= control target key end

     0   :  { %s1815_s0 = inlined_call_operand.vmem [shape: f32[2,8,4], index: 0, kind: input, shape index: {}]   ;;  %s1816_s1 = inlined_call_operand.vmem [shape: f32[2,12,6], index: 1, kind: input, shape index: {}]   ;;  %s1817_s2 = inlined_call_operand.vmem [shape: bf16[2,8,8], index: 2, kind: input, shape index: {}]   ;;  %s1818_s3 = inlined_call_operand.vmem [shape: bf16[2,12,12], index: 3, kind: input, shape index: {}]   ;;  %s1819_s4 = inlined_call_operand.vmem [shape: f32[2,1,8], index: 4, kind: input, shape index: {}]   ;;  %s1820_s5 = inlined_call_operand.vmem [shape: f32[2,1,12], index: 5, kind: input, shape index: {}]   ;;  %s1821_s6 = inlined_call_operand.vmem [shape: bf16[2,8,12], index: 6, kind: input, shape index: {}]   ;;  %s1822_s7 = inlined_call_operand.vmem [shape: f32[4,8], index: 7, kind: input, shape index: {}]   ;;  %s1823_s8 = inlined_call_operand.vmem [shape: f32[1,6], index: 8, kind: input, shape index: {}]   ;;  %s1824_s9 = inlined_call_operand.vmem [shape: f32[8,1], index: 9, kind: input, shape index: {}]   ;;  %s1825_s10 = inlined_call_operand.vmem [shape: f32[6,8], index: 10, kind: input, shape index: {}]   ;;  %s1826_s11 = inlined_call_operand.hbm [shape: f32[2,8,8], index: 11, kind: output, shape index: {0}]   ;;  %s1827_s12 = inlined_call_operand.vmem [shape: f32[2,12,8], index: 12, kind: output, shape index: {1}]  }
   0x1   :  { %1832 = sst [smem:[#allocation5_spill]] %s1815_s0 }
   0x2   :  { %1833 = sst [smem:[#allocation6_spill]] %s1816_s1 }
   0x3   :  { %1834 = sst [smem:[#allocation7_spill]] %s1817_s2 }
   0x4   :  { %1835 = sst [smem:[#allocation8_spill]] %s1818_s3 }
   0x5   :  { %1836 = sst [smem:[#allocation9_spill]] %s1819_s4 }
   0x6   :  { %18 = vsyncpa [#allocation3], 0 }
   0x7   :  { %20 = vsyncpa [#allocation3 + $0x1], 0  ;;  %s1589_s21 = smov 0   ;;  %s1591_s22 = smov 0  }
   0x8   :  { %s1593_s23 = smov 0   ;;  %s1595_s24 = smov 0  }
   0x9 LB: > { %s1610_s25 = sadd.s32 4294967295, %s1517_s24   ;;  %s1303_s26 = sadd.s32 4294967294, %s1517_s24   ;;  %s1517_s24 = sphi %s1595_s24, %s1851_s24   ;;  %s1513_s23 = sphi %s1593_s23, %s1850_s23   ;;  %s1509_s22 = sphi %s1591_s22, %s1849_s22   ;;  %s1505_s21 = sphi %s1589_s21, %s1848_s21  }
   0xa   : > { %s1614_s27 = sadd.s32 1, %s1517_s24   ;;  %s299_s28 = sadd.s32 1, %s1513_s23 }
   0xb   : > { %s296_s29 = ssub.s32 %s1517_s24, %s1614_s27  ;;  %p309_p0 = scmp.ne.s32.totalorder %s1513_s23, %s1509_s22 }
   0xc   : > { %p297_p1 = scmp.eq.s32.totalorder %s296_s29, 0  ;;  %p310_p2 = scmp.eq.s32.totalorder %s1610_s25, 1 }
   0xd   : > { %p315_p3 = scmp.ne.s32.totalorder %s1509_s22, %s1505_s21  ;;  %p316_p4 = scmp.eq.s32.totalorder %s1303_s26, 1 }
   0xe   : > { %s1625_s30 = scalar_select %p297_p1, %s1513_s23, %s299_s28  }
   0xf   : > { %p1627_p5 = por %p310_p2, %p309_p0  ;;  %p1631_p6 = por %p316_p4, %p315_p3 }
  0x10   : > { %p1306_p7 = scmp.ge.s32.totalorder %s1517_s24, 1  ;;  %p421_p8 = scmp.lt.s32.totalorder %s1517_s24, 3 }
  0x12   : > { %p422_p9 = pnand %p1306_p7, %p421_p8 }
  0x13   : > { %p491_p10 = scmp.lt.s32.totalorder (!%p422_p9), %s1610_s25, 1  ;;  %v1519_v0 = vmov (!%p422_p9), 0.0|0.0   ;;  %vm1520_vm0 = vmmov (!%p422_p9), 0   ;;  %v1521_v1 = vmov (!%p422_p9), 0.0   ;;  %vm559_vm1 = vcmask (!%p422_p9), 48128   ;;  %s1839_s1 = sld [smem:[#allocation6_spill]] (!%p422_p9) }
  0x14   : > { %425 = sbr.rel (%p422_p9) target bundleno = 1998 (0x7ce), region = 64  ;;  %1403 = vmatprep.subr.bf16.mxu0 (!%p422_p9), %v1519_v0  ;;  %1361 = vmatprep.mubr.msk.f32.mxu0 (!%p422_p9), %vm1520_vm0, %v1521_v1  ;;  %vm1405_vm2 = vmpackc.low (!%p422_p9), %vm559_vm1, %vm559_vm1  ;;  %v526_v5 = vld [vmem:[%s1823_s8] sm:$0x1] (!%p422_p9)  ;;  %vm646_vm3 = vcmask (!%p422_p9), 97280   ;;  %v529_v8 = vlaneseq (!%p422_p9)  ;;  %s1840_s0 = sld [smem:[#allocation5_spill]] (!%p422_p9)  ;;  %vm700_vm4 = vcmask (!%p422_p9), 1043456  }
  0x15   : > { %1364 = vmatprep.subr.bf16.mxu1 (!%p422_p9), %v1521_v1  ;;  %1366 = vmatprep.mubr.msk.bf16.mxu1 (!%p422_p9), %vm1520_vm0, %v1521_v1  ;;  %v525_v20 = vld [vmem:[%s1822_s7] sm:$0xf] (!%p422_p9)  ;;  %s1841_s4 = sld [smem:[#allocation9_spill]] (!%p422_p9)  ;;  %s1842_s2 = sld [smem:[#allocation7_spill]] (!%p422_p9)  ;;  %vm696_vm7 = vcmask (!%p422_p9), 64512   ;;  %vm744_vm8 = vcmask (!%p422_p9), 31744  }
  0x16   : > { %v1675_v9 = vshrl.u32 (!%p422_p9), %v529_v8, 7  ;;  %v1709_v23 = vand.u32 (!%p422_p9), 127, %v529_v8  ;;  %v527_v38 = vld [vmem:[%s1824_s9] sm:$0xff] (!%p422_p9)  ;;  %v1522_v43 = vmov (!%p422_p9), 0   ;;  %vm993_vm10 = vcmask (!%p422_p9), 1045504   ;;  %s1844_s3 = sld [smem:[#allocation8_spill]] (!%p422_p9) }
  0x17   : > { %1450 = vset.pattern.permute.xlu0 (!%p422_p9), %v1522_v43  ;;  %v528_v56 = vld [vmem:[%s1825_s10] sm:$0x3f] (!%p422_p9) }
  0x18   : > { %v1678_v10 = vsub.s32 (!%p422_p9), 0, %v1675_v9  ;;  %vm533_vm6 = vcmp.eq.s32.totalorder (!%p422_p9), %v1675_v9, %v1709_v23  ;;  %v536_v59 = vadd.s32 (!%p422_p9), 8, %v1675_v9 }
  0x19   : > { %v1714_v27 = vsel (!%p422_p9), %vm533_vm6, 1.0, %v1521_v1 }
  0x1a   : > { %vm537_vm12 = vcmp.eq.s32.totalorder (!%p422_p9), %v536_v59, %v1709_v23 }
  0x1b   : > { %s1641_s15 = scalar_select %p491_p10, %s1610_s25, 1 }
  0x1d   : > { %s1828_s16 = sshll.u32 %s1641_s15, 4  ;;  %s1311_s28 = sshll.u32 %s1641_s15, 2 }
  0x1e   : > { %s499_s19 = scalar_lea.vmem %s1839_s1, %s1828_s16  ;;  %s518_s18 = scalar_lea.vmem %s1821_s6, %s1311_s28 }
  0x1f   : > { %v542_v2 = vld [vmem:[%s499_s19] sm:$0xff]  ;;  %v543_v3 = vld [vmem:[%s499_s19 + $0x8] sm:$0xf]  ;;  %s1829_s19 = sshll.u32 %s1641_s15, 3  ;;  %s511_s26 = scalar_lea.vmem %s1841_s4, %s1641_s15 }
  0x20   : > { %v1654_v4 = vpack.c.bf16 %v543_v3, %v542_v2  ;;  %v1670_v6 = vld [vmem:[%s518_s18] sm:$0xf]  ;;  %s494_s29 = scalar_lea.vmem %s1840_s0, %s1829_s19  ;;  %s503_s0 = scalar_lea.vmem %s1842_s2, %s1311_s28  ;;  %v1318_v3 = vsel %vm537_vm12, 1.0, %v1521_v1 }
  0x21   : > { %v651_v7 = vsel %vm646_vm3, %v1670_v6, 0  ;;  %v639_v11 = vunpack.c.l.bf16 %v1670_v6  ;;  %v541_v17 = vld [vmem:[%s494_s29] sm:$0xff]  ;;  %s1830_s28 = sand.u32 1, %s1509_s22   ;;  %v943_v50 = vsel %vm700_vm4, %v1670_v6, 0  ;;  %s1843_s16 = sshll.u32 %s1641_s15, 3 }
  0x22   : > { %1406 = vmatpush3.bf16.xpose.msk.msra.mxu0 %vm1405_vm2, %v1654_v4  ;;  %1365 = vmatpush3.bf16.xpose.msra.mxu1 %v651_v7  ;;  %v695_v18 = vpack.c.bf16 %v541_v17, %v541_v17  ;;  %v544_v21 = vld [vmem:[%s511_s26] sm:$0x1]  ;;  %s1730_s19 = sshll.u32 %s1830_s28, 3  ;;  %v995_v55 = vsel %vm993_vm10, %v1654_v4, 0  ;;  %s508_s1 = scalar_lea.vmem %s1844_s3, %s1843_s16 }
  0x23   : > { %1370 = vmatprep.subr.bf16.mxu0 %v1521_v1  ;;  %1376 = vmatprep.subr.mxu1 %v1521_v1  ;;  %vm545_vm5 = vcmp.ne.f32.partialorder %v544_v21, 0.0  ;;  %v549_v24 = vld [vmem:[%s503_s0] sm:$0xf]  ;;  %s1831_s17 = scalar_lea.vmem [#allocation2], %s1730_s19  ;;  %s514_s0 = scalar_lea.vmem %s1820_s5, %s1641_s15  ;;  %v831_v61 = vld [vmem:[%s508_s1 + $0x4] sm:$0x3] }
  0x24   : > { %v702_v19 = vsel %vm700_vm4, %v695_v18, 0  ;;  %v546_v22 = vsel %vm545_vm5, %v544_v21, 1.0  ;;  %v550_v26 = vunpack.c.l.bf16 %v549_v24  ;;  %v825_v57 = vld [vmem:[%s514_s0] sm:$0x1]  ;;  %v833_v0 = vunpack.c.l.bf16 %v831_v61  ;;  %s1845_s28 = scalar_lea.vmem [#allocation2], %s1730_s19  ;;  %s1846_s29 = sand.u32 1, %s1509_s22  }
  0x25   : > { %1451 = vrsqrt.f32 %v546_v22  ;;  %vm826_vm11 = vcmp.ne.f32.partialorder %v825_v57, 0.0  ;;  %v830_v60 = vld [vmem:[%s508_s1] sm:$0xf]  ;;  %s1333_s1 = sshll.u32 %s1610_s25, 7  ;;  %s1132_s0 = scalar_lea.sflag [#allocation3], %s1846_s29 }
  0x26   : > { %v551_v29 = vadd.f32 %v1714_v27, %v550_v26  ;;  %v827_v58 = vsel %vm826_vm11, %v825_v57, 1.0  ;;  %v832_v63 = vunpack.c.l.bf16 %v830_v60  ;;  %v835_v6 = vadd.f32 %v1318_v3, %v833_v0  ;;  %s1771_s26 = scalar_lea.hbm %s1826_s11, %s1333_s1  ;;  %s1523_s2 = smov [#allocation2]  }
  0x27   : > { %1453 = vrsqrt.f32 %v827_v58  ;;  %s1459_s3 = sshll.u32 %s1523_s2, 4  ;;  %s1460_s3 = int_to_ptr.vmem [resolvable:$false] %s1459_s3 }
  0x28   : > { %v834_v4 = vadd.f32 %v1714_v27, %v832_v63  ;;  %s1461_s4 = scalar_lea.vmem %s1460_s3, 256 }
  0x29   : > { %1362 = vmatmul.mubr.msk.f32.vlgmr.msra.gmra.mrb[0].mxu0 %vm559_vm1, %v526_v5 }
  0x2a   : > { %1372 = vmatprep.mubr.msk.bf16.mxu0 %vm1520_vm0, %v1521_v1  ;;  %1371 = vmatpush3.bf16.msra.mxu0 %v702_v19 }
  0x2b   : > { %1381 = vmatprep.subr.mxu0 %v1521_v1 }
  0x2f   : > { %v1452_v25 = vpop.eup %1451 }
  0x30   : > { %v548_v28 = vsel %vm545_vm5, %v1452_v25, 0.0 }
  0x31   : > { %v556_v30 = vrot.slane %v548_v28, %v1678_v10  ;;  %v1454_v62 = vpop.eup %1453 }
  0x32   : > { %v829_v2 = vsel %vm826_vm11, %v1454_v62, 0.0 }
  0x33   : > { %v558_v31 = vmul.f32 %v556_v30, %v551_v29  ;;  %v840_v5 = vrot.slane %v829_v2, %v1678_v10 }
  0x35   : > { %v842_v7 = vmul.f32 %v840_v5, %v834_v4  ;;  %v843_v8 = vmul.f32 %v840_v5, %v835_v6 }
  0xfc   : > { %v635_v12 = vpop.f32.mrb[0].mxu0 }
  0xfd   : > { %v643_v13 = vrot.slane %v635_v12, %v1678_v10  ;;  %v1363_v14 = vpop.f32.mrb[1].mxu0 }
  0xff   : > { %v644_v15 = vmul.f32 %v643_v13, %v639_v11 }
 0x101   : > { %v645_v16 = vpack.c.bf16 %v644_v15, %v644_v15 }
 0x103   : > { %1367 = vmatmul.mubr.msk.bf16.vlgmr.msra.gmra.mrb[0].mxu1 %vm646_vm3, %v645_v16 }
 0x104   : > { %1378 = vmatprep.mubr.msk.f32.mxu1 %vm1520_vm0, %v1521_v1  ;;  %1377 = vmatpush3.msk.msra.mxu1 %vm700_vm4, %v525_v20 }
 0x105   : > { %1386 = vmatprep.subr.bf16.mxu1 %v1521_v1 }
 0x1d6   : > { %v687_v32 = vpop.f32.mrb[0].mxu1 }
 0x1d7   : > { %v693_v33 = vmul.f32 %v687_v32, %v558_v31  ;;  %v1368_v34 = vpop.f32.mrb[1].mxu1 }
 0x1d8   : > { %v690_v35 = vpop.f32.mrb[2].mxu1 }
 0x1d9   : > { %v694_v36 = vpack.c.bf16 %v693_v33, %v693_v33  ;;  %v1369_v37 = vpop.f32.mrb[3].mxu1 }
 0x1db   : > { %1373 = vmatmul.mubr.msk.bf16.vlgmr.msra.gmra.mrb[4].mxu0 %vm696_vm7, %v694_v36 }
 0x1dc   : > { %1383 = vmatprep.mubr.msk.f32.mxu0 %vm1520_vm0, %v1521_v1  ;;  %1382 = vmatpush3.msra.mxu0 %v527_v38 }
 0x1dd   : > { %1392 = vmatprep.subr.bf16.mxu0 %v1521_v1 }
 0x2ae   : > { %v738_v39 = vpop.f32.mrb[4].mxu0 }
 0x2af   : > { %v1374_v40 = vpop.f32.mrb[5].mxu0  ;;  %1379 = vmatmul.mubr.msk.f32.vlgmr.msra.gmra.mrb[4].mxu1 %vm744_vm8, %v738_v39 }
 0x2b0   : > { %v741_v41 = vpop.f32.mrb[6].mxu0  ;;  %1388 = vmatprep.mubr.msk.bf16.mxu1 %vm1520_vm0, %v1521_v1  ;;  %1387 = vmatpush3.bf16.msra.mxu1 %v943_v50 }
 0x2b1   : > { %v1375_v42 = vpop.f32.mrb[7].mxu0  ;;  %1398 = vmatprep.subr.msk.mxu1 %vm993_vm10, %v528_v56 }
 0x382   : > { %v817_v44 = vpop.f32.mrb[4].mxu1 }
 0x383   : > { %vm821_vm9 = vcmp.ge.f32.partialorder %v817_v44, 0.0  ;;  %v822_v45 = vmul.f32 0.01, %v817_v44  ;;  %v1380_v46 = vpop.f32.mrb[5].mxu1 }
 0x385   : > { %v823_v47 = vsel %vm821_vm9, %v817_v44, %v822_v45 }
 0x386   : > { %1384 = vmatmul.mubr.msk.f32.vlgmr.msra.gmra.mrb[2].mxu0 %vm696_vm7, %v823_v47  ;;  %824 = vst.msk [vmem:[%s1831_s17] sm:$0xff] %vm696_vm7, %v823_v47  ;;  %s1150_s17 = sshll.u32 %s1845_s28, 4  ;;  %s1151_s17 = int_to_ptr.vmem [resolvable:$true] %s1150_s17 }
 0x387   : > { %1394 = vmatprep.mubr.msk.bf16.mxu0 %vm1520_vm0, %v1521_v1  ;;  %1393 = vmatpush3.bf16.msra.mxu0 %v995_v55  ;;  %s1455_s16 = scalar_lea.vmem %s1151_s17, 128  ;;  %p1462_p0 = scmp.lt.s32.totalorder %s1151_s17, %s1460_s3 }
 0x388   : > { %p1456_p11 = scmp.ne.s32.totalorder %s1151_s17, %s1455_s16  ;;  %p1463_p1 = scmp.lt.s32.totalorder %s1461_s4, %s1455_s16 }
 0x38a   : > { %p1457_p12 = pnand %p1456_p11, %p1627_p5  ;;  %p1464_p2 = por %p1463_p1, %p1462_p0 }
 0x38c   : > { %p1458_p13 = pneg %p1457_p12 }
 0x38e   : > { %p1465_p3 = pnand %p1464_p2, %p1458_p13 }
 0x459   : > { %v913_v48 = vpop.f32.mrb[2].mxu0 }
 0x45a   : > { %919 = vperm.xlu0 %1450, %v913_v48   ;;  %v1385_v49 = vpop.f32.mrb[3].mxu0 }
 0x4d9   : > { %v920_v51 = vpop.permute.xlu0 %919 }
 0x4da   : > { %v922_v52 = vmul.f32 %v920_v51, %v639_v11 }
 0x4dc   : > { %v923_v53 = vpack.c.bf16 %v922_v52, %v922_v52 }
 0x4de   : > { %924 = vxpose.xlu0.c.b16.start.end [1/1] (short) (narrow) %v923_v53, 16 }
 0x544   : > { %v932_v54 = vpop.trf.xlu0 }
 0x545   : > { %1389 = vmatmul.mubr.msk.bf16.vlgmr.msra.gmra.mrb[8].mxu1 %vm696_vm7, %v932_v54 }
 0x546   : > { %1399 = vmatpush3.msk.msra.mxu1 %vm993_vm10, %v528_v56 }
 0x618   : > { %v979_v9 = vpop.f32.mrb[8].mxu1 }
 0x619   : > { %v1390_v11 = vpop.f32.mrb[9].mxu1  ;;  %v986_v13 = vmul.f32 %v979_v9, %v842_v7 }
 0x61a   : > { %v982_v12 = vpop.f32.mrb[10].mxu1 }
 0x61b   : > { %v987_v14 = vmul.f32 %v982_v12, %v843_v8  ;;  %v1391_v15 = vpop.f32.mrb[11].mxu1 }
 0x61d   : > { %v988_v16 = vpack.c.bf16 %v987_v14, %v986_v13 }
 0x61f   : > { %1395 = vmatmul.mubr.msk.bf16.vlgmr.msra.gmra.mrb[8].mxu0 %vm646_vm3, %v988_v16 }
 0x6f2   : > { %v1031_v1 = vpop.f32.mrb[8].mxu0 }
 0x6f3   : > { %v1396_v17 = vpop.f32.mrb[9].mxu0  ;;  %1400 = vmatprep.mubr.msk.f32.mxu1 %vm559_vm1, %v1031_v1 }
 0x6f4   : > { %v1034_v10 = vpop.f32.mrb[10].mxu0 }
 0x6f5   : > { %v1397_v18 = vpop.f32.mrb[11].mxu0  ;;  %1401 = vmatmul.mubr.msk.f32.vlgmr.msra.gmra.mrb[6].mxu1 %vm559_vm1, %v1034_v10 }
 0x6f6   : > { %1468 = shalt.err (!%p1465_p3)
}
 0x6f7   : > { %s1469_s25 = scalar_lea.hbm %s1771_s26, 128  ;;  %s1473_s2 = scalar_lea.hbm %s1826_s11, 256 }
 0x6f8   : > { %p1470_p4 = scmp.ne.s32.totalorder %s1771_s26, %s1469_s25  ;;  %p1474_p9 = scmp.lt.u32.totalorder %s1771_s26, %s1826_s11 }
 0x6f9   : > { %p1475_p10 = scmp.lt.u32.totalorder %s1473_s2, %s1469_s25  ;;  %p1477_p12 = scmp.lt.u32.totalorder %s1469_s25, %s1771_s26 }
 0x6fa   : > { %p1471_p7 = pnand %p1470_p4, %p1627_p5 }
 0x6fb   : > { %p1476_p11 = por %p1475_p10, %p1474_p9 }
 0x6fc   : > { %p1472_p8 = pneg %p1471_p7 }
 0x6fd   : > { %p1478_p13 = por %p1477_p12, %p1476_p11 }
 0x6ff   : > { %p1479_p0 = pnand %p1478_p13, %p1472_p8 }
 0x701   : > { %1482 = shalt.err (!%p1479_p0)
}
 0x702   : > { %1407 = dma.vmem_to_hbm [thread:$0]  (%p1627_p5), %s1151_s17, 128, %s1771_s26, %s1132_s0   ;;  %vm1129_vm14 = vcmask 60416  }
 0x703   : > { %s1847_s4 = sshll.u32 %s1641_s15, 4 }
 0x704   : > { %s523_s29 = scalar_lea.vmem %s1827_s12, %s1847_s4 }
 0x7c8   : > { %v1402_v19 = vpop.f32.mrb[6].mxu1 }
 0x7c9   : > { %vm1123_vm13 = vcmp.ge.f32.partialorder %v1402_v19, 0.0  ;;  %v1125_v20 = vmul.f32 0.01, %v1402_v19  ;;  %v1113_v21 = vpop.f32.mrb[7].mxu1 }
 0x7ca   : > { %vm1122_vm15 = vcmp.ge.f32.partialorder %v1113_v21, 0.0  ;;  %v1124_v22 = vmul.f32 0.01, %v1113_v21 }
 0x7cb   : > { %v1127_v23 = vsel %vm1123_vm13, %v1402_v19, %v1125_v20 }
 0x7cc   : > { %1130 = vst.msk [vmem:[%s523_s29 + $0x8] sm:$0xf] %vm1129_vm14, %v1127_v23  ;;  %v1126_v24 = vsel %vm1122_vm15, %v1113_v21, %v1124_v22 }
 0x7cd   : > { %1128 = vst.msk [vmem:[%s523_s29] sm:$0xff] %vm696_vm7, %v1126_v24 }
 0x7ce PF: > { %p1413_p5 = scmp.ge.s32.totalorder %s1517_s24, 2  ;;  %s1165_s13 = sand.u32 1, %s1505_s21  }
 0x7cf   : > { %s1166_s15 = scalar_lea.sflag [#allocation3], %s1165_s13 }
 0x7d0   : > { %p1410_p1 = pnand %p1413_p5, %p1631_p6 }
 0x7d2   : > { %1500 = dma.done.wait (!%p1410_p1), %s1166_s15, 128  }
 0x7d3   : > { %1502 = vsyncadd (!%p1410_p1), %s1166_s15, 4294967168  ;;  %p23_p2 = scmp.ge.s32.totalorder %s1614_s27, 4   ;;  %s1848_s21 = smov %s1509_s22 }
 0x7d4   : > { %s1849_s22 = smov %s1513_s23  ;;  %s1850_s23 = smov %s1625_s30 }
 0x7d5   : > { %s1851_s24 = smov %s1614_s27  ;;  %25 = sbr.rel (!%p23_p2) target bundleno = 9 (0x9), region = 129 }
 0x7dc   :  { %1179 = vsyncpa [#allocation3], 1 }
 0x7dd   :  { %1181 = vsyncpa [#allocation3 + $0x1], 1 }

</bundles_post_ra>
